<compile_context>
chip_gen: v6e
topology: v6e:2x2x1
jax: 0.10.0
libtpu: 0.0.40
codegen_flags: <defaults>
</compile_context>

<pallas_src>
import numpy as np
import jax
import jax.numpy as jnp
from jax.experimental import pallas as pl
from jax.experimental.pallas import tpu as pltpu

_VMEM_LIMIT = 48 * 1024 * 1024  # safe on v5e/v6e (128 MiB) and v7x (64 MiB)


# ----------------------------------------------------------------------------
# 3x3 equalized conv: tiled (M, N, tap) reduction matmul
# ----------------------------------------------------------------------------
def _conv3x3_kernel(p_ref, w_ref, o_ref, acc_ref):
    # p_ref: (1, tm, Cin) one tap's rows; w_ref: (1, Cin, tn); o_ref: (tm, tn)
    t = pl.program_id(2)

    @pl.when(t == 0)
    def _init():
        acc_ref[...] = jnp.zeros_like(acc_ref)

    acc_ref[...] += jnp.dot(p_ref[0], w_ref[0],
                            preferred_element_type=jnp.float32)

    @pl.when(t == pl.num_programs(2) - 1)
    def _done():
        o_ref[...] = acc_ref[...].astype(o_ref.dtype)


def conv3x3_equalized(x, w):
    """x: (B,H,W,Cin) bf16, w: (9,Cin,Cout) bf16 (equalized-lr scale folded in)."""
    B, H, W, Cin = x.shape
    Cout = w.shape[-1]
    R = B * H * W
    xp = jnp.pad(x, ((0, 0), (1, 1), (1, 1), (0, 0)))          # glue: padding
    taps = jnp.stack(                                           # glue: im2col
        [xp[:, dy:dy + H, dx:dx + W, :].reshape(R, Cin)
         for dy in range(3) for dx in range(3)], axis=0)        # (9, R, Cin)

    tm = R if R < 256 else 256
    tn = Cout if Cout < 256 else 256
    assert R % tm == 0 and Cout % tn == 0 and tm % 8 == 0

    itm = jnp.dtype(x.dtype).itemsize
    flops = 2 * R * Cin * Cout * 9
    bytes_accessed = 9 * R * Cin * itm + 9 * Cin * Cout * itm + R * Cout * itm

    out = pl.pallas_call(
        _conv3x3_kernel,
        out_shape=jax.ShapeDtypeStruct((R, Cout), x.dtype),
        grid_spec=pltpu.PrefetchScalarGridSpec(
            num_scalar_prefetch=0,
            grid=(R // tm, Cout // tn, 9),
            in_specs=[pl.BlockSpec((1, tm, Cin), lambda i, j, t: (t, i, 0)),
                      pl.BlockSpec((1, Cin, tn), lambda i, j, t: (t, 0, j))],
            out_specs=pl.BlockSpec((tm, tn), lambda i, j, t: (i, j)),
            scratch_shapes=[pltpu.VMEM((tm, tn), jnp.float32)],
        ),
        compiler_params=pltpu.CompilerParams(
            dimension_semantics=("parallel", "parallel", "arbitrary"),
            vmem_limit_bytes=_VMEM_LIMIT),
        cost_estimate=pl.CostEstimate(flops=flops, transcendentals=0,
                                      bytes_accessed=bytes_accessed),
    )(taps, w)
    return out.reshape(B, H, W, Cout)


# ----------------------------------------------------------------------------
# 1x1 to_rgb conv (+bias), lane-dense output (Cout padded to 128)
# ----------------------------------------------------------------------------
def _conv1x1_kernel(x_ref, w_ref, b_ref, o_ref):
    y = jnp.dot(x_ref[...], w_ref[...], preferred_element_type=jnp.float32)
    o_ref[...] = (y + b_ref[...]).astype(o_ref.dtype)


def conv1x1_equalized(x, w, b):
    """x: (B,H,W,Cin) bf16, w: (Cin,Cout) bf16, b: (1,Cout) f32 -> (B,H,W,Cout) f32."""
    B, H, W, Cin = x.shape
    Cout = w.shape[-1]
    R = B * H * W
    CP = max(128, ((Cout + 127) // 128) * 128)                  # lane-dense output
    wp = jnp.zeros((Cin, CP), w.dtype).at[:, :Cout].set(w)
    bp = jnp.zeros((1, CP), jnp.float32).at[:, :Cout].set(b)

    tm = R if R < 512 else 512
    assert R % tm == 0 and tm % 8 == 0

    out = pl.pallas_call(
        _conv1x1_kernel,
        out_shape=jax.ShapeDtypeStruct((R, CP), jnp.float32),
        grid_spec=pltpu.PrefetchScalarGridSpec(
            num_scalar_prefetch=0,
            grid=(R // tm,),
            in_specs=[pl.BlockSpec((tm, Cin), lambda i: (i, 0)),
                      pl.BlockSpec((Cin, CP), lambda i: (0, 0)),
                      pl.BlockSpec((1, CP), lambda i: (0, 0))],
            out_specs=pl.BlockSpec((tm, CP), lambda i: (i, 0)),
        ),
        compiler_params=pltpu.CompilerParams(
            dimension_semantics=("parallel",),
            vmem_limit_bytes=_VMEM_LIMIT),
        cost_estimate=pl.CostEstimate(
            flops=2 * R * Cin * CP, transcendentals=0,
            bytes_accessed=R * Cin * 2 + Cin * CP * 2 + R * CP * 4),
    )(x.reshape(R, Cin), wp, bp)
    return out[:, :Cout].reshape(B, H, W, Cout)


# ----------------------------------------------------------------------------
# Fused Noise + LeakyReLU + InstanceNorm2d + StyleMod (channel tiled)
# ----------------------------------------------------------------------------
def _post_kernel(x_ref, n_ref, nw_ref, sc_ref, bi_ref, o_ref):
    # x: (1, S, tc)  noise: (1, S, 1)  nw: (1, tc)  scale/bias: (1, 1, tc)
    x = x_ref[0].astype(jnp.float32)                       # (S, tc)
    n = n_ref[0].astype(jnp.float32)                       # (S, 1)
    # Noise injection: per-channel weight * single-channel spatial noise
    x = x + n * nw_ref[...].astype(jnp.float32)
    # LeakyReLU(0.2)
    x = jnp.where(x > 0, x, 0.2 * x)
    # InstanceNorm2d: per (batch, channel) over spatial, biased var, eps=1e-5
    inv_s = 1.0 / x.shape[0]
    mean = jnp.sum(x, axis=0, keepdims=True) * inv_s
    var = jnp.sum(x * x, axis=0, keepdims=True) * inv_s - mean * mean
    var = jnp.maximum(var, 0.0)
    x = (x - mean) * jax.lax.rsqrt(var + 1e-5)
    # StyleMod: y = x * (scale + 1) + bias  (the +1 folded in the wrapper)
    scale = sc_ref[0].astype(jnp.float32)                  # (1, tc)
    bias = bi_ref[0].astype(jnp.float32)
    o_ref[0] = (x * scale + bias).astype(o_ref.dtype)


def noise_lrelu_in_style(x, noise, nw, lat, sw, sb):
    """Fused Noise + LeakyReLU + InstanceNorm2d + StyleMod. x: (B,H,W,C) bf16."""
    B, H, W, C = x.shape
    S = H * W
    # Style affine hoisted out of the kernel (M=B rows: negligible MXU work and
    # it would otherwise block channel tiling inside the kernel).
    style = jnp.dot(lat.astype(jnp.float32), sw) + sb      # (B, 2C)
    scale = (style[:, :C] + 1.0).reshape(B, 1, C)
    bias = style[:, C:].reshape(B, 1, C)

    tc = C if C < 256 else 256
    assert C % tc == 0 and S % 8 == 0

    out = pl.pallas_call(
        _post_kernel,
        out_shape=jax.ShapeDtypeStruct((B, S, C), x.dtype),
        grid_spec=pltpu.PrefetchScalarGridSpec(
            num_scalar_prefetch=0,
            grid=(B, C // tc),
            in_specs=[pl.BlockSpec((1, S, tc), lambda b, c: (b, 0, c)),
                      pl.BlockSpec((1, S, 1), lambda b, c: (b, 0, 0)),
                      pl.BlockSpec((1, tc), lambda b, c: (0, c)),
                      pl.BlockSpec((1, 1, tc), lambda b, c: (b, 0, c)),
                      pl.BlockSpec((1, 1, tc), lambda b, c: (b, 0, c))],
            out_specs=pl.BlockSpec((1, S, tc), lambda b, c: (b, 0, c)),
        ),
        compiler_params=pltpu.CompilerParams(
            dimension_semantics=("parallel", "parallel"),
            vmem_limit_bytes=_VMEM_LIMIT),
        cost_estimate=pl.CostEstimate(
            flops=10 * B * S * C, transcendentals=B * C,
            bytes_accessed=2 * B * S * C * jnp.dtype(x.dtype).itemsize),
    )(x.reshape(B, S, C), noise.reshape(B, S, 1), nw, scale, bias)
    return out.reshape(B, H, W, C)


# ----------------------------------------------------------------------------
# Plain-JAX glue (layout shuffles only)
# ----------------------------------------------------------------------------
def pixel_shuffle_nhwc(x, r=2):
    # matches torch.nn.PixelShuffle: channel index = co*r*r + i*r + j
    B, H, W, C = x.shape
    Co = C // (r * r)
    x = x.reshape(B, H, W, Co, r, r)
    x = jnp.transpose(x, (0, 1, 4, 2, 5, 3))
    return x.reshape(B, H * r, W * r, Co)


def upsample_nearest_2x(x):
    return jnp.repeat(jnp.repeat(x, 2, axis=1), 2, axis=2)


# ----------------------------------------------------------------------------
# Parameters (deterministic synthetic init)
# ----------------------------------------------------------------------------
LATENT_DIM = 32
BLOCK_CFG = [
    # (in_ch, out_ch, is_init, upscale)
    (512, 512, True, False),   # BlockInit(512, 512)
    (512, 512, False, True),   # Block(512, 512)
    (512, 512, False, True),
    (512, 512, False, True),
    (512, 256, False, True),
    (256, 128, False, True),
]
RGB_IN = [512, 512, 512, 512, 256, 128]


def _eq_conv3x3_weight(key, cin, cout):
    # Conv2dEqualized: N(0,1) init, He scale sqrt(2 / fan_in) folded into weight
    w = jax.random.normal(key, (9, cin, cout), jnp.float32)
    return (w * np.sqrt(2.0 / (cin * 9))).astype(jnp.bfloat16)


def make_block_params(key, cfg, latent_dim):
    in_ch, out_ch, is_init, upscale = cfg
    ks = jax.random.split(key, 6)
    p = {}
    if is_init:
        mid = in_ch
    else:
        c0_out = out_ch * 4 if upscale else out_ch   # conv0 feeds PixelShuffle(2)
        p["w0"] = _eq_conv3x3_weight(ks[0], in_ch, c0_out)
        mid = out_ch
    p["nw0"] = 0.1 * jax.random.normal(ks[1], (1, mid), jnp.float32)
    p["sw0"] = jax.random.normal(ks[2], (latent_dim, 2 * mid), jnp.float32) * np.sqrt(1.0 / latent_dim)
    p["sb0"] = jnp.zeros((1, 2 * mid), jnp.float32)
    p["w1"] = _eq_conv3x3_weight(ks[3], mid, out_ch)
    p["nw1"] = 0.1 * jax.random.normal(ks[4], (1, out_ch), jnp.float32)
    p["sw1"] = jax.random.normal(ks[5], (latent_dim, 2 * out_ch), jnp.float32) * np.sqrt(1.0 / latent_dim)
    p["sb1"] = jnp.zeros((1, 2 * out_ch), jnp.float32)
    return p


def make_rgb_params(key, cin):
    w = (jax.random.normal(key, (cin, 3), jnp.float32) * np.sqrt(2.0 / cin)).astype(jnp.bfloat16)
    b = jnp.zeros((1, 3), jnp.float32)
    return {"w": w, "b": b}


def make_params(key, depth, alpha, latent_dim=LATENT_DIM):
    keys = jax.random.split(key, 2 * len(BLOCK_CFG))
    params = {
        # nn.Parameter(torch.ones(1, 512, 4, 4)) / (1, 512, 1, 1) in NHWC
        "init_block": jnp.ones((1, 4, 4, 512), jnp.float32),
        "init_block_bias": jnp.ones((1, 1, 1, 512), jnp.float32),
        "blocks": {},
        "to_rgb": {},
    }
    for idx in range(depth + 1):
        params["blocks"][idx] = make_block_params(keys[idx], BLOCK_CFG[idx], latent_dim)
    rgb_needed = {depth} | ({depth - 1} if (depth > 0 and alpha < 1.0) else set())
    for idx in rgb_needed:
        params["to_rgb"][idx] = make_rgb_params(keys[len(BLOCK_CFG) + idx], RGB_IN[idx])
    return params


# ----------------------------------------------------------------------------
# Forward pass (mirrors GeneratorSynth.forward)
# ----------------------------------------------------------------------------
def apply_block(p, cfg, x, lat2, noise_key):
    in_ch, out_ch, is_init, upscale = cfg
    k0, k1 = jax.random.split(noise_key)
    if not is_init:
        x = conv3x3_equalized(x, p["w0"])
        if upscale:
            x = pixel_shuffle_nhwc(x, 2)
    B, H, W, _ = x.shape
    # TODO(synk): torch Noise draws fresh randn each forward; here the noise maps
    # are deterministic functions of a fixed PRNG key.
    n0 = jax.random.normal(k0, (B, H, W, 1), jnp.float32)
    x = noise_lrelu_in_style(x, n0, p["nw0"], lat2[:, :, 0], p["sw0"], p["sb0"])
    x = conv3x3_equalized(x, p["w1"])
    B, H, W, _ = x.shape
    n1 = jax.random.normal(k1, (B, H, W, 1), jnp.float32)
    x = noise_lrelu_in_style(x, n1, p["nw1"], lat2[:, :, 1], p["sw1"], p["sb1"])
    return x


def generator_synth_forward(params, latent, depth, alpha, noise_key):
    # latent: (B, latent_dim, n_blocks, 2); latent[:, :, idx] feeds block idx
    B = latent.shape[0]
    x = jnp.broadcast_to(params["init_block"], (B, 4, 4, 512)) + params["init_block_bias"]
    x = x.astype(jnp.bfloat16)
    nkeys = jax.random.split(noise_key, len(BLOCK_CFG))
    if depth > 0 and alpha < 1.0:
        for idx in range(depth):
            x = apply_block(params["blocks"][idx], BLOCK_CFG[idx], x,
                            latent[:, :, idx], nkeys[idx])
        x_ = conv1x1_equalized(x, params["to_rgb"][depth - 1]["w"],
                               params["to_rgb"][depth - 1]["b"])
        x_ = upsample_nearest_2x(x_)
        x = apply_block(params["blocks"][depth], BLOCK_CFG[depth], x,
                        latent[:, :, depth], nkeys[depth])
        x = conv1x1_equalized(x, params["to_rgb"][depth]["w"],
                              params["to_rgb"][depth]["b"])
        x = alpha * x + (1.0 - alpha) * x_
    else:
        for idx in range(depth + 1):
            x = apply_block(params["blocks"][idx], BLOCK_CFG[idx], x,
                            latent[:, :, idx], nkeys[idx])
        x = conv1x1_equalized(x, params["to_rgb"][depth]["w"],
                              params["to_rgb"][depth]["b"])
    return x  # NHWC rgb image, float32


if __name__ == "__main__":
    key = jax.random.PRNGKey(0)
    pkey, lkey, nkey = jax.random.split(key, 3)

    B = 2
    depth = 1       # blocks 0 (4x4) and 1 (upscale to 8x8)
    alpha = 0.7     # exercises the fade-in blend branch

    latent = jax.random.normal(lkey, (B, LATENT_DIM, len(BLOCK_CFG), 2), jnp.float32)
    params = make_params(pkey, depth, alpha)

    out = generator_synth_forward(params, latent, depth, alpha, nkey)
    out = jax.block_until_ready(out)

    assert out.shape == (B, 8, 8, 3), out.shape
    assert bool(jnp.all(jnp.isfinite(out)))
    print("KERNEL_OK")
</pallas_src>

<mosaic_0001>
module attributes {stable_mosaic.version = 11 : i64} {
  func.func @_post_kernel(%arg0: i32, %arg1: i32, %arg2: memref<1x16x256xbf16, #tpu.memory_space<vmem>>, %arg3: memref<1x16x1xf32, #tpu.memory_space<vmem>>, %arg4: memref<1x256xf32, #tpu.memory_space<vmem>>, %arg5: memref<1x1x256xf32, #tpu.memory_space<vmem>>, %arg6: memref<1x1x256xf32, #tpu.memory_space<vmem>>, %arg7: memref<1x16x256xbf16, #tpu.memory_space<vmem>>) attributes {dimension_semantics = [#tpu.dimension_semantics<parallel>, #tpu.dimension_semantics<parallel>], iteration_bounds = array<i64: 2, 2>, scalar_prefetch = 0 : i64, scratch_operands = 0 : i64, tpu.core_type = #tpu.core_type<tc>, window_params = [{transform_indices = @transform_0, window_bounds = array<i64: 1, 16, 256>}, {transform_indices = @transform_1, window_bounds = array<i64: 1, 16, 1>}, {transform_indices = @transform_2, window_bounds = array<i64: 1, 256>}, {transform_indices = @transform_3, window_bounds = array<i64: 1, 1, 256>}, {transform_indices = @transform_4, window_bounds = array<i64: 1, 1, 256>}, {transform_indices = @transform_5, window_bounds = array<i64: 1, 16, 256>}]} {
    %c0 = arith.constant 0 : index
    %c0_0 = arith.constant 0 : index
    %c0_1 = arith.constant 0 : index
    %0 = vector.load %arg2[%c0, %c0_0, %c0_1] : memref<1x16x256xbf16, #tpu.memory_space<vmem>>, vector<1x16x256xbf16>
    %1 = vector.shape_cast %0 : vector<1x16x256xbf16> to vector<16x256xbf16>
    %2 = arith.extf %1 : vector<16x256xbf16> to vector<16x256xf32>
    %c0_2 = arith.constant 0 : index
    %c0_3 = arith.constant 0 : index
    %c0_4 = arith.constant 0 : index
    %3 = vector.load %arg3[%c0_2, %c0_3, %c0_4] : memref<1x16x1xf32, #tpu.memory_space<vmem>>, vector<1x16x1xf32>
    %4 = vector.shape_cast %3 : vector<1x16x1xf32> to vector<16x1xf32>
    %c0_5 = arith.constant 0 : index
    %c0_6 = arith.constant 0 : index
    %5 = vector.load %arg4[%c0_5, %c0_6] : memref<1x256xf32, #tpu.memory_space<vmem>>, vector<1x256xf32>
    %6 = vector.broadcast %4 : vector<16x1xf32> to vector<16x256xf32>
    %7 = vector.broadcast %5 : vector<1x256xf32> to vector<16x256xf32>
    %8 = arith.mulf %6, %7 : vector<16x256xf32>
    %9 = arith.addf %2, %8 : vector<16x256xf32>
    %cst = arith.constant 0.000000e+00 : f32
    %10 = vector.broadcast %cst : f32 to vector<16x256xf32>
    %11 = arith.cmpf ogt, %9, %10 : vector<16x256xf32>
    %cst_7 = arith.constant 2.000000e-01 : f32
    %12 = vector.broadcast %cst_7 : f32 to vector<16x256xf32>
    %13 = arith.mulf %12, %9 : vector<16x256xf32>
    %14 = arith.select %11, %9, %13 : vector<16x256xi1>, vector<16x256xf32>
    %cst_8 = arith.constant dense<0.000000e+00> : vector<256xf32>
    %15 = vector.multi_reduction <add>, %14, %cst_8 [0] : vector<16x256xf32> to vector<256xf32>
    %16 = vector.shape_cast %15 : vector<256xf32> to vector<1x256xf32>
    %cst_9 = arith.constant 6.250000e-02 : f32
    %17 = vector.broadcast %cst_9 : f32 to vector<1x256xf32>
    %18 = arith.mulf %16, %17 : vector<1x256xf32>
    %19 = arith.mulf %14, %14 : vector<16x256xf32>
    %cst_10 = arith.constant dense<0.000000e+00> : vector<256xf32>
    %20 = vector.multi_reduction <add>, %19, %cst_10 [0] : vector<16x256xf32> to vector<256xf32>
    %21 = vector.shape_cast %20 : vector<256xf32> to vector<1x256xf32>
    %cst_11 = arith.constant 6.250000e-02 : f32
    %22 = vector.broadcast %cst_11 : f32 to vector<1x256xf32>
    %23 = arith.mulf %21, %22 : vector<1x256xf32>
    %24 = arith.mulf %18, %18 : vector<1x256xf32>
    %25 = arith.subf %23, %24 : vector<1x256xf32>
    %cst_12 = arith.constant 0.000000e+00 : f32
    %26 = vector.broadcast %cst_12 : f32 to vector<1x256xf32>
    %27 = arith.maximumf %25, %26 : vector<1x256xf32>
    %28 = vector.broadcast %18 : vector<1x256xf32> to vector<16x256xf32>
    %29 = arith.subf %14, %28 : vector<16x256xf32>
    %cst_13 = arith.constant 9.99999974E-6 : f32
    %30 = vector.broadcast %cst_13 : f32 to vector<1x256xf32>
    %31 = arith.addf %27, %30 : vector<1x256xf32>
    %32 = math.rsqrt %31 : vector<1x256xf32>
    %33 = vector.broadcast %32 : vector<1x256xf32> to vector<16x256xf32>
    %34 = arith.mulf %29, %33 : vector<16x256xf32>
    %c0_14 = arith.constant 0 : index
    %c0_15 = arith.constant 0 : index
    %c0_16 = arith.constant 0 : index
    %35 = vector.load %arg5[%c0_14, %c0_15, %c0_16] : memref<1x1x256xf32, #tpu.memory_space<vmem>>, vector<1x1x256xf32>
    %36 = vector.shape_cast %35 : vector<1x1x256xf32> to vector<1x256xf32>
    %c0_17 = arith.constant 0 : index
    %c0_18 = arith.constant 0 : index
    %c0_19 = arith.constant 0 : index
    %37 = vector.load %arg6[%c0_17, %c0_18, %c0_19] : memref<1x1x256xf32, #tpu.memory_space<vmem>>, vector<1x1x256xf32>
    %38 = vector.shape_cast %37 : vector<1x1x256xf32> to vector<1x256xf32>
    %39 = vector.broadcast %36 : vector<1x256xf32> to vector<16x256xf32>
    %40 = arith.mulf %34, %39 : vector<16x256xf32>
    %41 = vector.broadcast %38 : vector<1x256xf32> to vector<16x256xf32>
    %42 = arith.addf %40, %41 : vector<16x256xf32>
    %43 = arith.truncf %42 : vector<16x256xf32> to vector<16x256xbf16>
    %c0_20 = arith.constant 0 : index
    %c0_21 = arith.constant 0 : index
    %c0_22 = arith.constant 0 : index
    %44 = vector.load %arg7[%c0_20, %c0_21, %c0_22] : memref<1x16x256xbf16, #tpu.memory_space<vmem>>, vector<1x16x256xbf16>
    %45 = vector.shape_cast %44 : vector<1x16x256xbf16> to vector<16x256xbf16>
    %46 = vector.shape_cast %43 : vector<16x256xbf16> to vector<1x16x256xbf16>
    tpu.vector_store %arg7[%c0_20, %c0_21, %c0_22], %46 {strides = array<i32>} : memref<1x16x256xbf16, #tpu.memory_space<vmem>>, vector<1x16x256xbf16>,
    return
  }
  func.func @transform_0(%arg0: i32, %arg1: i32) -> (i32, i32, i32) {
    %c0_i32 = arith.constant 0 : i32
    %c0_i32_0 = arith.constant 0 : i32
    return %arg0, %c0_i32, %arg1 : i32, i32, i32
  }
  func.func @transform_1(%arg0: i32, %arg1: i32) -> (i32, i32, i32) {
    %c0_i32 = arith.constant 0 : i32
    %c0_i32_0 = arith.constant 0 : i32
    %c0_i32_1 = arith.constant 0 : i32
    return %arg0, %c0_i32, %c0_i32_0 : i32, i32, i32
  }
  func.func @transform_2(%arg0: i32, %arg1: i32) -> (i32, i32) {
    %c0_i32 = arith.constant 0 : i32
    %c0_i32_0 = arith.constant 0 : i32
    return %c0_i32, %arg1 : i32, i32
  }
  func.func @transform_3(%arg0: i32, %arg1: i32) -> (i32, i32, i32) {
    %c0_i32 = arith.constant 0 : i32
    %c0_i32_0 = arith.constant 0 : i32
    return %arg0, %c0_i32, %arg1 : i32, i32, i32
  }
  func.func @transform_4(%arg0: i32, %arg1: i32) -> (i32, i32, i32) {
    %c0_i32 = arith.constant 0 : i32
    %c0_i32_0 = arith.constant 0 : i32
    return %arg0, %c0_i32, %arg1 : i32, i32, i32
  }
  func.func @transform_5(%arg0: i32, %arg1: i32) -> (i32, i32, i32) {
    %c0_i32 = arith.constant 0 : i32
    %c0_i32_0 = arith.constant 0 : i32
    return %arg0, %c0_i32, %arg1 : i32, i32, i32
  }
}

</mosaic_0001>

<bundles_post_ra>
// kernel: tpu_custom_call.1
= control target key start
LH: loop header
LB: loop body
LE: loop exit
PB: predicated region body
PF: predicated region fallthrough
CT: control target
= control target key end

     0   :  { %10 = vsyncpa [#allocation3], 0  ;;  %s1192_s0 = inlined_call_operand.hbm [shape: bf16[2,16,512], index: 0, kind: input, shape index: {}]   ;;  %s1193_s1 = inlined_call_operand.vmem [shape: f32[2,16,1], index: 1, kind: input, shape index: {}]   ;;  %s1194_s2 = inlined_call_operand.vmem [shape: f32[1,512], index: 2, kind: input, shape index: {}]   ;;  %s1195_s3 = inlined_call_operand.vmem [shape: f32[2,1,512], index: 3, kind: input, shape index: {}]   ;;  %s1196_s4 = inlined_call_operand.vmem [shape: f32[2,1,512], index: 4, kind: input, shape index: {}]   ;;  %s1197_s5 = inlined_call_operand.hbm [shape: bf16[2,16,512], index: 5, kind: output, shape index: {}]  }
   0x1   :  { %12 = vsyncpa [#allocation3 + $0x1], 0 }
   0x2   :  { %13 = vsyncpa [#allocation4], 0 }
   0x3   :  { %15 = vsyncpa [#allocation4 + $0x1], 0  ;;  %s959_s18 = smov 0   ;;  %s961_s19 = smov 0  }
   0x4   :  { %s963_s20 = smov 0   ;;  %s965_s21 = smov 0  }
   0x5   :  { %s967_s22 = smov 0   ;;  %s969_s23 = smov 0  }
   0x6   :  { %s971_s24 = smov 0   ;;  %s973_s25 = smov 0  }
   0x7 LB: > { %1202 = sst [smem:[#allocation8_spill]] %s890_s18  ;;  %s675_s26 = sadd.s32 4294967295, %s918_s25   ;;  %s918_s25 = sphi %s973_s25, %s21_s25   ;;  %s914_s24 = sphi %s971_s24, %s1214_s24   ;;  %s910_s23 = sphi %s969_s23, %s1219_s23   ;;  %s906_s22 = sphi %s967_s22, %s1212_s22   ;;  %s902_s21 = sphi %s965_s21, %s1218_s21   ;;  %s898_s20 = sphi %s963_s20, %s1217_s20   ;;  %s894_s19 = sphi %s961_s19, %s1216_s19   ;;  %s890_s18 = sphi %s959_s18, %s1215_s18  }
   0x8   : > { %1203 = sst [smem:[#allocation9_spill]] %s914_s24  ;;  %s676_s27 = sadd.s32 4294967294, %s918_s25  }
   0x9   : > { %s30_s28 = sadd.s32 1, %s910_s23  ;;  %s33_s29 = sadd.s32 1, %s914_s24 }
   0xa   : > { %p31_p0 = scmp.ge.s32.totalorder %s30_s28, 2  ;;  %s42_s30 = sadd.s32 1, %s898_s20 }
   0xb   : > { %p49_p1 = scmp.ne.s32.totalorder %s898_s20, %s894_s19  ;;  %p50_p2 = scmp.eq.s32.totalorder %s918_s25, 0 }
   0xc   : > { %s1221_s28 = smov (%p31_p0, %s30_s28), 0  ;;  %s1223_s29 = smov (!%p31_p0, %s33_s29), %s914_s24 }
   0xd   : > { %1204 = sst [smem:[#allocation10_spill]] %s1221_s28  ;;  %s38_s6 = ssub.s32 %s910_s23, %s1221_s28 }
   0xe   : > { %p1012_p3 = por %p50_p2, %p49_p1  ;;  %p35_p4 = scmp.ge.s32.totalorder %s1223_s29, 2 }
   0xf   : > { %p55_p5 = scmp.ne.s32.totalorder %s894_s19, %s890_s18  ;;  %p56_p6 = scmp.eq.s32.totalorder %s675_s26, 0 }
  0x10   : > { %p189_p7 = scmp.eq.s32.totalorder %s675_s26, 3  ;;  %s1225_s29 = smov (%p35_p4, %s1223_s29), 0 }
  0x11   : > { %1206 = sst [smem:[#allocation11_spill]] %s1225_s29  ;;  %p1020_p8 = por %p56_p6, %p55_p5 }
  0x12   : > { %p1024_p9 = por %p189_p7, %p49_p1  ;;  %s37_s10 = ssub.s32 %s914_s24, %s1225_s29 }
  0x13   : > { %p195_p10 = scmp.eq.s32.totalorder %s676_s27, 3  ;;  %s39_s11 = sor.u32 %s38_s6, %s37_s10 }
  0x14   : > { %p40_p11 = scmp.eq.s32.totalorder %s39_s11, 0  ;;  %p716_p13 = scmp.lt.s32.totalorder %s918_s25, 4 }
  0x15   : > { %p1030_p12 = por %p195_p10, %p55_p5  ;;  %s215_s13 = sand.u32 1, %s898_s20  }
  0x16   : > { %s1037_s14 = scalar_select %p40_p11, %s898_s20, %s42_s30  }
  0x17   : > { %s679_s15 = sshll.u32 %s215_s13, 4  ;;  %s680_s16 = sshll.u32 %s910_s23, 1 }
  0x18   : > { %s681_s17 = sshll.u32 %s914_s24, 3  ;;  %s219_s26 = scalar_lea.vmem [#allocation2], %s679_s15 }
  0x19   : > { %s228_s28 = sshll.u32 %s219_s26, 4  ;;  %s225_s18 = sadd.s32 %s681_s17, %s680_s16  ;;  %s229_s28 = int_to_ptr.vmem [resolvable:$true] %s228_s28 }
  0x1a   : > { %s682_s29 = sshll.u32 %s225_s18, 6  ;;  %p1043_p0 = pnand %p716_p13, %p1012_p3 }
  0x1b   : > { %s227_s11 = scalar_lea.hbm %s1192_s0, %s682_s29  ;;  %p683_p1 = scmp.ge.s32.totalorder %s918_s25, 1 }
  0x1c   : > { %s216_s30 = scalar_lea.sflag [#allocation3], %s215_s13  ;;  %p796_p2 = pneg %p1043_p0 }
  0x1d   : > { %s807_s24 = scalar_lea.vmem %s229_s28, 256  ;;  %s920_s15 = smov [#allocation2]  }
  0x1e   : > { %p808_p4 = scmp.ne.s32.totalorder %s229_s28, %s807_s24  ;;  %s812_s18 = sshll.u32 %s920_s15, 4  ;;  %s813_s18 = int_to_ptr.vmem [resolvable:$false] %s812_s18 }
  0x1f   : > { %s814_s7 = scalar_lea.vmem %s813_s18, 512  ;;  %p815_p3 = scmp.lt.s32.totalorder %s229_s28, %s813_s18 }
  0x20   : > { %p810_p5 = pnand %p808_p4, %p796_p2  ;;  %p816_p7 = scmp.lt.s32.totalorder %s814_s7, %s807_s24 }
  0x22   : > { %p811_p6 = pneg %p810_p5  ;;  %p817_p10 = por %p816_p7, %p815_p3 }
  0x24   : > { %p818_p11 = pnand %p817_p10, %p811_p6 }
  0x26   : > { %821 = shalt.err (!%p818_p11)
}
  0x27   : > { %s921_s16 = smov 256   ;;  %s922_s29 = smov 128  }
  0x28   : > { %s923_s13 = smov 8   ;;  %p276_p13 = scmp.lt.s32.totalorder %s918_s25, 5 }
  0x29   : > { %711 = dma.hbm_to_vmem [thread:$0]  (!%p1043_p0), %s227_s11, 256, %s229_s28, %s216_s30, %s921_s16, %s922_s29, %s923_s13  }
  0x2a   : > { %p277_p2 = pnand %p683_p1, %p276_p13 }
  0x2b   : > { %s1059_s17 = sand.u32 (!%p277_p2), 1, %s894_s19  }
  0x2c   : > { %280 = sbr.rel (%p277_p2) target bundleno = 255 (0xff), region = 40  ;;  %s684_s24 = sshll.u32 (!%p277_p2), %s1059_s17, 4 }
  0x2d   : > { %s283_s26 = scalar_lea.sflag (!%p277_p2), [#allocation3], %s1059_s17  ;;  %s286_s6 = scalar_lea.vmem (!%p277_p2), [#allocation2], %s684_s24 }
  0x31   : > { %881 = dma.done.wait (%p1020_p8), %s283_s26, 256  }
  0x32   : > { %883 = vsyncadd (%p1020_p8), %s283_s26, 4294967040  ;;  %p339_p0 = scmp.lt.s32.totalorder %s906_s22, 1  ;;  %v924_v0 = vmov 0   ;;  %s1078_s8 = sshll.u32 %s902_s21, 1  ;;  %v388_v3 = vlaneseq  ;;  %v368_v8 = vld [vmem:[%s286_s6] sm:$0xff]  ;;  %v369_v16 = vld [vmem:[%s286_s6 + $0x8] sm:$0xff] }
  0x33   : > { %789 = vset.pattern.permute.xlu0 %v924_v0  ;;  %p345_p8 = scmp.lt.s32.totalorder %s1078_s8, 3  ;;  %v370_v11 = vunpack.c.l.bf16 %v368_v8  ;;  %v371_v12 = vunpack.c.h.bf16 %v368_v8  ;;  %v372_v20 = vunpack.c.l.bf16 %v369_v16  ;;  %v373_v21 = vunpack.c.h.bf16 %v369_v16 }
  0x34   : > { %s1071_s28 = scalar_select %p339_p0, %s906_s22, 1  ;;  %v389_v4 = vshrl.u32 %v388_v3, 7 }
  0x35   : > { %s1082_s15 = scalar_select %p345_p8, %s1078_s8, 3 }
  0x36   : > { %s701_s27 = sshll.u32 %s1071_s28, 4  ;;  %v1088_v5 = vsub.s32 0, %v389_v4  ;;  %v1090_v6 = vsub.s32 1, %v389_v4  ;;  %s690_s21 = sshll.u32 %s1071_s28, 2 }
  0x37   : > { %s343_s30 = scalar_lea.vmem %s1193_s1, %s701_s27  ;;  %s347_s16 = scalar_lea.vmem %s1194_s2, %s1082_s15 }
  0x38   : > { %v374_v1 = vld [vmem:[%s343_s30] sm:$0xff]  ;;  %v375_v2 = vld [vmem:[%s343_s30 + $0x8] sm:$0xff]  ;;  %s355_s29 = sadd.s32 %s690_s21, %s1082_s15  ;;  %s697_s30 = sshll.u32 %s906_s22, 3 }
  0x39   : > { %379 = vperm.xlu0 %789, %v374_v1   ;;  %v376_v7 = vld [vmem:[%s347_s16] sm:$0x3]  ;;  %s356_s6 = scalar_lea.vmem %s1195_s3, %s355_s29  ;;  %s365_s11 = scalar_lea.vmem %s1196_s4, %s355_s29 }
  0x3a   : > { %v391_v9 = vrot.slane %v376_v7, %v1088_v5  ;;  %v395_v10 = vrot.slane %v376_v7, %v1090_v6  ;;  %v472_v16 = vld [vmem:[%s356_s6] sm:$0x3]  ;;  %s531_s28 = sadd.s32 %s697_s30, %s1078_s8  ;;  %s337_s8 = scalar_lea.vmem [#allocation5], %s684_s24 }
  0x3b   : > { %s698_s22 = sshll.u32 %s531_s28, 6  ;;  %s534_s15 = sshll.u32 %s337_s8, 4  ;;  %s1139_s15 = int_to_ptr.vmem [resolvable:$true] %s534_s15 }
  0x3c   : > { %s1137_s16 = scalar_lea.hbm %s1197_s5, %s698_s22  ;;  %s519_s24 = scalar_lea.sflag [#allocation4], %s1059_s17 }
  0x3d   : > { %384 = vperm.xlu0 %789, %v375_v2   ;;  %s822_s21 = scalar_lea.vmem %s1139_s15, 256  ;;  %s925_s29 = smov [#allocation5]  }
  0x3e   : > { %p823_p1 = scmp.ne.s32.totalorder %s1139_s15, %s822_s21  ;;  %s826_s13 = sshll.u32 %s925_s29, 4  ;;  %s827_s13 = int_to_ptr.vmem [resolvable:$false] %s826_s13 }
  0x3f   : > { %s828_s26 = scalar_lea.vmem %s827_s13, 512  ;;  %p829_p6 = scmp.lt.s32.totalorder %s1139_s15, %s827_s13 }
  0x40   : > { %p824_p4 = pnand %p823_p1, %p1024_p9  ;;  %p830_p3 = scmp.lt.s32.totalorder %s828_s26, %s822_s21 }
  0x42   : > { %p825_p5 = pneg %p824_p4  ;;  %p831_p7 = por %p830_p3, %p829_p6 }
  0x44   : > { %p832_p10 = pnand %p831_p7, %p825_p5 }
  0xb4   : > { %v380_v13 = vpop.permute.xlu0 %379 }
  0xb5   : > { %v398_v14 = vmul.f32 %v391_v9, %v380_v13  ;;  %v399_v15 = vmul.f32 %v395_v10, %v380_v13 }
  0xb7   : > { %v402_v17 = vadd.f32 %v398_v14, %v370_v11  ;;  %v403_v18 = vadd.f32 %v399_v15, %v371_v12 }
  0xb8   : > { %v385_v19 = vpop.permute.xlu0 %384 }
  0xb9   : > { %v410_v22 = vmul.f32 0.2, %v402_v17  ;;  %v411_v23 = vmul.f32 0.2, %v403_v18  ;;  %vm406_vm0 = vcmp.gt.f32.partialorder %v402_v17, 0.0  ;;  %vm407_vm1 = vcmp.gt.f32.partialorder %v403_v18, 0.0 }
  0xba   : > { %v400_v24 = vmul.f32 %v391_v9, %v385_v19  ;;  %v401_v25 = vmul.f32 %v395_v10, %v385_v19 }
  0xbb   : > { %v1094_v28 = vsel %vm406_vm0, %v402_v17, %v410_v22  ;;  %v1096_v29 = vsel %vm407_vm1, %v403_v18, %v411_v23  ;;  %v473_v17 = vld [vmem:[%s365_s11] sm:$0x3]  ;;  %v478_v18 = vrot.slane %v472_v16, %v1088_v5  ;;  %v482_v22 = vrot.slane %v472_v16, %v1090_v6 }
  0xbc   : > { %v404_v26 = vadd.f32 %v400_v24, %v372_v20  ;;  %v405_v27 = vadd.f32 %v401_v25, %v373_v21  ;;  %v434_v32 = vmul.f32 %v1094_v28, %v1094_v28  ;;  %v435_v33 = vmul.f32 %v1096_v29, %v1096_v29 }
  0xbe   : > { %vm408_vm2 = vcmp.gt.f32.partialorder %v404_v26, 0.0  ;;  %vm409_vm3 = vcmp.gt.f32.partialorder %v405_v27, 0.0  ;;  %v412_v30 = vmul.f32 0.2, %v404_v26  ;;  %v413_v31 = vmul.f32 0.2, %v405_v27 }
  0xc0   : > { %v1102_v34 = vsel %vm408_vm2, %v404_v26, %v412_v30  ;;  %v1104_v35 = vsel %vm409_vm3, %v405_v27, %v413_v31  ;;  %v493_v26 = vrot.slane %v473_v17, %v1088_v5  ;;  %v497_v31 = vrot.slane %v473_v17, %v1090_v6 }
  0xc1   : > { %v418_v36 = vadd.f32 %v1102_v34, %v1094_v28  ;;  %v425_v37 = vadd.f32 %v1104_v35, %v1096_v29  ;;  %v436_v38 = vmul.f32 %v1102_v34, %v1102_v34  ;;  %v437_v39 = vmul.f32 %v1104_v35, %v1104_v35 }
  0xc3   : > { %v419_v40 = vrot.slane %v418_v36, 4  ;;  %v426_v41 = vrot.slane %v425_v37, 4  ;;  %v438_v42 = vadd.f32 %v436_v38, %v434_v32  ;;  %v445_v43 = vadd.f32 %v437_v39, %v435_v33 }
  0xc5   : > { %v420_v44 = vadd.f32 %v419_v40, %v418_v36  ;;  %v427_v45 = vadd.f32 %v426_v41, %v425_v37  ;;  %v439_v46 = vrot.slane %v438_v42, 4  ;;  %v446_v47 = vrot.slane %v445_v43, 4 }
  0xc7   : > { %v421_v48 = vrot.slane %v420_v44, 2  ;;  %v428_v49 = vrot.slane %v427_v45, 2  ;;  %v440_v50 = vadd.f32 %v439_v46, %v438_v42  ;;  %v447_v51 = vadd.f32 %v446_v47, %v445_v43 }
  0xc9   : > { %v422_v52 = vadd.f32 %v421_v48, %v420_v44  ;;  %v429_v53 = vadd.f32 %v428_v49, %v427_v45  ;;  %v441_v54 = vrot.slane %v440_v50, 2  ;;  %v448_v55 = vrot.slane %v447_v51, 2 }
  0xcb   : > { %v423_v56 = vrot.slane %v422_v52, 1  ;;  %v430_v57 = vrot.slane %v429_v53, 1  ;;  %v442_v58 = vadd.f32 %v441_v54, %v440_v50  ;;  %v449_v59 = vadd.f32 %v448_v55, %v447_v51 }
  0xcd   : > { %v424_v60 = vadd.f32 %v423_v56, %v422_v52  ;;  %v431_v61 = vadd.f32 %v430_v57, %v429_v53  ;;  %v443_v62 = vrot.slane %v442_v58, 1  ;;  %v450_v63 = vrot.slane %v449_v59, 1 }
  0xcf   : > { %v432_v0 = vmul.f32 0.0625, %v424_v60  ;;  %v433_v1 = vmul.f32 0.0625, %v431_v61  ;;  %v444_v2 = vadd.f32 %v443_v62, %v442_v58  ;;  %v451_v3 = vadd.f32 %v450_v63, %v449_v59 }
  0xd1   : > { %v452_v4 = vmul.f32 0.0625, %v444_v2  ;;  %v453_v7 = vmul.f32 0.0625, %v451_v3  ;;  %v454_v8 = vmul.f32 %v432_v0, %v432_v0  ;;  %v455_v9 = vmul.f32 %v433_v1, %v433_v1 }
  0xd2   : > { %v460_v19 = vsub.f32 %v1094_v28, %v432_v0  ;;  %v462_v20 = vsub.f32 %v1102_v34, %v432_v0  ;;  %v461_v23 = vsub.f32 %v1096_v29, %v433_v1  ;;  %v463_v24 = vsub.f32 %v1104_v35, %v433_v1 }
  0xd3   : > { %v456_v10 = vsub.f32 %v452_v4, %v454_v8  ;;  %v457_v11 = vsub.f32 %v453_v7, %v455_v9 }
  0xd5   : > { %v458_v12 = vmax.f32 %v456_v10, 0.0  ;;  %v459_v13 = vmax.f32 %v457_v11, 0.0 }
  0xd7   : > { %v464_v14 = vadd.f32 1e-05, %v458_v12  ;;  %v465_v15 = vadd.f32 1e-05, %v459_v13 }
  0xd9   : > { %790 = vrsqrt.f32 %v464_v14 }
  0xda   : > { %792 = vrsqrt.f32 %v465_v15 }
  0xe6   : > { %v791_v21 = vpop.eup %790 }
  0xe7   : > { %v793_v25 = vpop.eup %792  ;;  %v468_v27 = vmul.f32 %v791_v21, %v460_v19  ;;  %v470_v30 = vmul.f32 %v791_v21, %v462_v20 }
  0xe8   : > { %v469_v32 = vmul.f32 %v793_v25, %v461_v23  ;;  %v471_v28 = vmul.f32 %v793_v25, %v463_v24 }
  0xe9   : > { %v485_v33 = vmul.f32 %v478_v18, %v468_v27  ;;  %v487_v34 = vmul.f32 %v478_v18, %v470_v30 }
  0xea   : > { %v486_v36 = vmul.f32 %v482_v22, %v469_v32  ;;  %v488_v37 = vmul.f32 %v482_v22, %v471_v28 }
  0xeb   : > { %v500_v29 = vadd.f32 %v493_v26, %v485_v33  ;;  %v502_v35 = vadd.f32 %v493_v26, %v487_v34 }
  0xec   : > { %v501_v5 = vadd.f32 %v497_v31, %v486_v36  ;;  %v503_v6 = vadd.f32 %v497_v31, %v488_v37 }
  0xee   : > { %v703_v38 = vpack.c.bf16 %v503_v6, %v502_v35  ;;  %v702_v39 = vpack.c.bf16 %v501_v5, %v500_v29 }
  0xf0   : > { %516 = vst [vmem:[%s337_s8] sm:$0xff] %v702_v39  ;;  %517 = vst [vmem:[%s337_s8 + $0x8] sm:$0xff] %v703_v38 }
  0xf1   : > { %835 = shalt.err (!%p832_p10)
}
  0xf2   : > { %s836_s6 = scalar_lea.hbm %s1137_s16, 256  ;;  %s840_s11 = scalar_lea.hbm %s1197_s5, 1024 }
  0xf3   : > { %p837_p11 = scmp.ne.s32.totalorder %s1137_s16, %s836_s6  ;;  %p841_p0 = scmp.lt.s32.totalorder %s1137_s16, %s1197_s5 }
  0xf4   : > { %p842_p8 = scmp.lt.s32.totalorder %s840_s11, %s836_s6 }
  0xf5   : > { %p838_p13 = pnand %p837_p11, %p1024_p9 }
  0xf6   : > { %p843_p1 = por %p842_p8, %p841_p0 }
  0xf7   : > { %p839_p2 = pneg %p838_p13 }
  0xf9   : > { %p844_p4 = pnand %p843_p1, %p839_p2 }
  0xfb   : > { %847 = shalt.err (!%p844_p4)
}
  0xfc   : > { %s926_s22 = smov 128   ;;  %s927_s8 = smov 256  }
  0xfd   : > { %s928_s18 = smov 8  }
  0xfe   : > { %706 = dma.vmem_to_hbm [thread:$0]  (%p1024_p9), %s1139_s15, 256, %s1137_s16, %s519_s24, %s926_s22, %s927_s8, %s928_s18  }
  0xff PF: > { %s1211_s7 = sld [smem:[#allocation8_spill]]  ;;  %p717_p5 = scmp.ge.s32.totalorder %s918_s25, 2 }
 0x101   : > { %p713_p6 = pnand %p717_p5, %p1030_p12 }
 0x103   : > { %p714_p3 = pneg %p713_p6 }
 0x105   : > { %s549_s21 = sand.u32 1, %s1211_s7  }
 0x106   : > { %s550_s29 = scalar_lea.sflag [#allocation4], %s549_s21 }
 0x107   : > { %885 = dma.done.wait (%p714_p3), %s550_s29, 256  }
 0x108   : > { %887 = vsyncadd (%p714_p3), %s550_s29, 4294967040  ;;  %s21_s25 = sadd.s32 1, %s918_s25   ;;  %s1212_s22 = sld [smem:[#allocation9_spill]] }
 0x109   : > { %p18_p7 = scmp.ge.s32.totalorder %s21_s25, 6   ;;  %s1213_s9 = sld [smem:[#allocation10_spill]] }
 0x10a   : > { %s1214_s24 = sld [smem:[#allocation11_spill]]  ;;  %s1215_s18 = smov %s894_s19 }
 0x10b   : > { %s1216_s19 = smov %s898_s20  ;;  %s1217_s20 = smov %s1037_s14 }
 0x10c   : > { %s1218_s21 = smov %s910_s23  ;;  %20 = sbr.rel (!%p18_p7) target bundleno = 7 (0x7), region = 97 }
 0x10f   : > { %s1219_s23 = smov %s1213_s9 }
 0x111   :  { %555 = vsyncpa [#allocation3], 1 }
 0x112   :  { %557 = vsyncpa [#allocation3 + $0x1], 1 }
 0x113   :  { %558 = vsyncpa [#allocation4], 1 }
 0x114   :  { %560 = vsyncpa [#allocation4 + $0x1], 1 }

</bundles_post_ra>
